<compile_context>
chip_gen: v7x
topology: tpu7x:2x2x1
jax: 0.10.0
libtpu: 0.0.40
codegen_flags: <defaults>
</compile_context>

<pallas_src>
import functools

import jax
import jax.numpy as jnp
from jax import lax
from jax.experimental import pallas as pl
from jax.experimental.pallas import tpu as pltpu


# -----------------------------------------------------------------------------
# Kernel 1: fused  y = bilinear_up(x) + conv1x1(relu(BN1(skip)))
#           plus per-tile channel sum / sum-of-squares of y for BN2 stats.
# Layout: channel-first, spatial flattened into lanes.
# -----------------------------------------------------------------------------
def merge_kernel(skip_ref, x_ref, gT_ref, s1_ref, b1_ref, w1_ref, bc1_ref,
                 y_ref, ysum_ref, ysq_ref):
    # BN1 apply + ReLU on the skip tile: (Cin, thw)
    act1 = jnp.maximum(skip_ref[0] * s1_ref[...] + b1_ref[...], 0.0)
    # 1x1 conv as (Cout, Cin) @ (Cin, thw): bf16 MXU operands, f32 accumulate.
    skip2 = jnp.dot(w1_ref[...].astype(jnp.bfloat16),
                    act1.astype(jnp.bfloat16),
                    preferred_element_type=jnp.float32) + bc1_ref[...]
    # Bilinear upsample (align_corners=True) of this lane tile as ONE matmul
    # with the precomputed Kronecker interpolation matrix (f32 for accuracy,
    # compute here is tiny):  (Cout, Hx*Wx) @ (Hx*Wx, thw)
    up = jnp.dot(x_ref[0], gT_ref[...], preferred_element_type=jnp.float32)
    y = up + skip2                               # (Cout, thw), lane-dense
    y_ref[0] = y
    # Per-tile BN2 statistics (cross-lane reduce -> XLU), so the wrapper never
    # has to re-read y from HBM for bn_fold.
    ysum_ref[0, 0] = jnp.sum(y, axis=-1, keepdims=True)
    ysq_ref[0, 0] = jnp.sum(y * y, axis=-1, keepdims=True)


# -----------------------------------------------------------------------------
# Kernel 2: out = conv3x3(relu(y * scale + bias), padding=1)
# Layout: (Cout, H*W) with H*W in lanes.  The 9 taps are flat lane-offset
# slices of a row-zero-padded activation plus column-boundary masks; each tap
# is a (Cout, Cout) @ (Cout, H*W) bf16 matmul accumulated in f32.
# -----------------------------------------------------------------------------
def conv3x3_kernel(W, y_ref, s2_ref, b2_ref, w9_ref, bc3_ref, mask_ref, o_ref):
    Co, HW = y_ref.shape[1], y_ref.shape[2]
    # BN2 apply + ReLU: (Co, HW)
    act = jnp.maximum(y_ref[0] * s2_ref[...] + b2_ref[...], 0.0)
    # Zero "rows" above/below (plus one element of slack for the corner taps);
    # only 2*(W+1) zero lanes per step — no full pad-buffer zeroing.
    zpad = jnp.zeros((Co, W + 1), jnp.float32)
    padded = jnp.concatenate([zpad, act, zpad], axis=1).astype(jnp.bfloat16)
    # Column-boundary masks (precomputed in the wrapper, hoisted out of kernel).
    m = mask_ref[...].astype(jnp.bfloat16)
    mask_l = m[0:1, :]            # zero where w == 0      (taps with dw == 0)
    mask_r = m[1:2, :]            # zero where w == W - 1  (taps with dw == 2)
    w9 = w9_ref[...].astype(jnp.bfloat16)          # (9, Co, Co)
    # Fold the conv bias into the accumulator init (saves one full VPU add).
    acc = bc3_ref[...] + jnp.zeros((Co, HW), jnp.float32)
    for dh in range(3):
        for dw in range(3):
            start = dh * W + dw
            cand = padded[:, start:start + HW]     # tap (dh, dw), (Co, HW)
            if dw == 0:
                cand = cand * mask_l
            elif dw == 2:
                cand = cand * mask_r
            acc = acc + jnp.dot(w9[dh * 3 + dw], cand,
                                preferred_element_type=jnp.float32)
    o_ref[0] = acc
    # TODO(synk): for production-size images add H-tiling with a 1-row halo
    # (grid (B, H//th)) so the per-step block stays within v7x's 64 MiB VMEM.


# -----------------------------------------------------------------------------
# Plain-JAX glue
# -----------------------------------------------------------------------------
def interp_matrix(out_size, in_size):
    """Row-interpolation matrix for bilinear, align_corners=True."""
    if in_size == 1:
        return jnp.ones((out_size, 1), jnp.float32)
    if out_size == 1:
        return jnp.zeros((1, in_size), jnp.float32).at[0, 0].set(1.0)
    src = jnp.arange(out_size, dtype=jnp.float32) * (in_size - 1) / (out_size - 1)
    lo = jnp.clip(jnp.floor(src).astype(jnp.int32), 0, in_size - 2)
    frac = src - lo.astype(jnp.float32)
    rows = jnp.arange(out_size)
    m = jnp.zeros((out_size, in_size), jnp.float32)
    m = m.at[rows, lo].set(1.0 - frac)
    m = m.at[rows, lo + 1].add(frac)
    return m


def _pick_hw_tile(hw):
    """Lane tile for the merge kernel: multiple of 128, big, and >=2 tiles when
    possible (pipelining + v7x 2-TensorCore sharding)."""
    if hw % 128 != 0:
        return hw                       # full extent fallback (still correct)
    for cand in (2048, 1024, 512, 256, 128):
        if hw % cand == 0 and hw // cand >= 2:
            return cand
    return hw


@functools.partial(jax.jit, static_argnames=())
def ladder_forward(x_nchw, skip_nchw, params, eps=1e-5):
    B, Cin, H, W = skip_nchw.shape
    Cout = params["w1"].shape[0]
    Hx, Wx = x_nchw.shape[2], x_nchw.shape[3]
    HW = H * W

    # --- BN1 training-mode batch statistics (tiny per-channel reduction) ---
    m1 = jnp.mean(skip_nchw, axis=(0, 2, 3))
    v1 = jnp.mean((skip_nchw - m1[None, :, None, None]) ** 2, axis=(0, 2, 3))
    s1 = params["g1"] / jnp.sqrt(v1 + eps)
    b1 = params["bt1"] - m1 * s1

    # --- bilinear (align_corners=True) as one matmul with kron(Rh, Rw) ---
    rh = interp_matrix(H, Hx)                   # (H, Hx)
    rw = interp_matrix(W, Wx)                   # (W, Wx)
    gT = jnp.transpose(jnp.kron(rh, rw))        # (Hx*Wx, H*W)
    # (For very large H*W the kron matrix should be replaced by the separable
    #  two-matmul form; fine at ladder-decoder scales.)

    skip_f = skip_nchw.reshape(B, Cin, HW)      # free reshape, channel-first
    x_f = x_nchw.reshape(B, Cout, Hx * Wx)

    thw = _pick_hw_tile(HW)
    nT = HW // thw

    y, ysum, ysq = pl.pallas_call(
        merge_kernel,
        out_shape=(jax.ShapeDtypeStruct((B, Cout, HW), jnp.float32),
                   jax.ShapeDtypeStruct((B, nT, Cout, 1), jnp.float32),
                   jax.ShapeDtypeStruct((B, nT, Cout, 1), jnp.float32)),
        grid=(B, nT),
        in_specs=[
            pl.BlockSpec((1, Cin, thw), lambda b, t: (b, 0, t)),
            pl.BlockSpec((1, Cout, Hx * Wx), lambda b, t: (b, 0, 0)),
            pl.BlockSpec((Hx * Wx, thw), lambda b, t: (0, t)),
            pl.BlockSpec((Cin, 1), lambda b, t: (0, 0)),
            pl.BlockSpec((Cin, 1), lambda b, t: (0, 0)),
            pl.BlockSpec((Cout, Cin), lambda b, t: (0, 0)),
            pl.BlockSpec((Cout, 1), lambda b, t: (0, 0)),
        ],
        out_specs=(
            pl.BlockSpec((1, Cout, thw), lambda b, t: (b, 0, t)),
            pl.BlockSpec((1, 1, Cout, 1), lambda b, t: (b, t, 0, 0)),
            pl.BlockSpec((1, 1, Cout, 1), lambda b, t: (b, t, 0, 0)),
        ),
        compiler_params=pltpu.CompilerParams(
            dimension_semantics=("parallel", "parallel"),
            vmem_limit_bytes=32 * 1024 * 1024),
    )(skip_f, x_f, gT,
      s1.reshape(Cin, 1), b1.reshape(Cin, 1),
      params["w1"].reshape(Cout, Cin), params["bc1"].reshape(Cout, 1))

    # --- BN2 fold from the in-kernel partial sums (no extra read of y) ---
    n = B * HW
    m2 = jnp.sum(ysum, axis=(0, 1, 3)) / n
    v2 = jnp.sum(ysq, axis=(0, 1, 3)) / n - m2 * m2
    s2 = params["g2"] / jnp.sqrt(v2 + eps)
    b2 = params["bt2"] - m2 * s2

    # PyTorch conv weight (O, I, 3, 3) -> (9, O, I)
    w9 = jnp.transpose(params["w3"], (2, 3, 0, 1)).reshape(9, Cout, Cout)
    # Column-boundary masks for the flattened-lane 3x3 taps.
    col = jnp.arange(HW, dtype=jnp.int32) % W
    mask = jnp.stack([(col != 0), (col != W - 1)]).astype(jnp.float32)  # (2,HW)

    out = pl.pallas_call(
        functools.partial(conv3x3_kernel, W),
        out_shape=jax.ShapeDtypeStruct((B, Cout, HW), jnp.float32),
        grid=(B,),
        in_specs=[
            pl.BlockSpec((1, Cout, HW), lambda b: (b, 0, 0)),
            pl.BlockSpec((Cout, 1), lambda b: (0, 0)),
            pl.BlockSpec((Cout, 1), lambda b: (0, 0)),
            pl.BlockSpec((9, Cout, Cout), lambda b: (0, 0, 0)),
            pl.BlockSpec((Cout, 1), lambda b: (0, 0)),
            pl.BlockSpec((2, HW), lambda b: (0, 0)),
        ],
        out_specs=pl.BlockSpec((1, Cout, HW), lambda b: (b, 0, 0)),
        compiler_params=pltpu.CompilerParams(
            dimension_semantics=("parallel",),
            vmem_limit_bytes=32 * 1024 * 1024),
    )(y, s2.reshape(Cout, 1), b2.reshape(Cout, 1), w9,
      params["bc3"].reshape(Cout, 1), mask)

    return out.reshape(B, Cout, H, W)            # NCHW via free reshape


def reference_forward(x_nchw, skip_nchw, params, eps=1e-5):
    """Pure-JAX reference (no Pallas) for verification."""
    hp = lax.Precision.HIGHEST
    B, Cin, H, W = skip_nchw.shape
    Cout = params["w1"].shape[0]
    skip = jnp.transpose(skip_nchw, (0, 2, 3, 1))
    m1 = skip.mean(axis=(0, 1, 2))
    v1 = ((skip - m1) ** 2).mean(axis=(0, 1, 2))
    a1 = jnp.maximum((skip - m1) / jnp.sqrt(v1 + eps) * params["g1"]
                     + params["bt1"], 0.0)
    w1_mat = jnp.transpose(params["w1"].reshape(Cout, Cin), (1, 0))
    s2 = jnp.einsum("bhwc,co->bhwo", a1, w1_mat, precision=hp) + params["bc1"]

    rh = interp_matrix(H, x_nchw.shape[2])
    rw = interp_matrix(W, x_nchw.shape[3])
    up = jnp.einsum("hp,wq,bcpq->bhwc", rh, rw, x_nchw, precision=hp)

    y = up + s2
    m2 = y.mean(axis=(0, 1, 2))
    v2 = ((y - m2) ** 2).mean(axis=(0, 1, 2))
    a2 = jnp.maximum((y - m2) / jnp.sqrt(v2 + eps) * params["g2"]
                     + params["bt2"], 0.0)
    w3_hwio = jnp.transpose(params["w3"], (2, 3, 1, 0))
    out = lax.conv_general_dilated(
        a2, w3_hwio, window_strides=(1, 1), padding="SAME",
        dimension_numbers=("NHWC", "HWIO", "NHWC"), precision=hp) + params["bc3"]
    return jnp.transpose(out, (0, 3, 1, 2))


if __name__ == "__main__":
    # Small shapes: in_channels=4, out_channels=8, skip spatial 16x16,
    # x (the low-res path) has out_channels and spatial 8x8.
    B, Cin, Cout = 2, 4, 8
    H, W = 16, 16
    Hx, Wx = 8, 8

    keys = jax.random.split(jax.random.PRNGKey(0), 10)
    x = jax.random.normal(keys[0], (B, Cout, Hx, Wx), jnp.float32)
    skip = jax.random.normal(keys[1], (B, Cin, H, W), jnp.float32)

    params = {
        "g1": 1.0 + 0.1 * jax.random.normal(keys[2], (Cin,), jnp.float32),
        "bt1": 0.1 * jax.random.normal(keys[3], (Cin,), jnp.float32),
        "w1": 0.5 * jax.random.normal(keys[4], (Cout, Cin, 1, 1), jnp.float32),
        "bc1": 0.1 * jax.random.normal(keys[5], (Cout,), jnp.float32),
        "g2": 1.0 + 0.1 * jax.random.normal(keys[6], (Cout,), jnp.float32),
        "bt2": 0.1 * jax.random.normal(keys[7], (Cout,), jnp.float32),
        "w3": 0.2 * jax.random.normal(keys[8], (Cout, Cout, 3, 3), jnp.float32),
        "bc3": 0.1 * jax.random.normal(keys[9], (Cout,), jnp.float32),
    }

    out = jax.block_until_ready(ladder_forward(x, skip, params))
    ref = jax.block_until_ready(reference_forward(x, skip, params))

    assert out.shape == (B, Cout, H, W), out.shape
    # Tolerance accounts for bf16 MXU operands in the conv matmuls (per perf
    # guidance) vs. the HIGHEST-precision pure-JAX reference.
    assert jnp.allclose(out, ref, atol=2e-2, rtol=2e-2), float(
        jnp.max(jnp.abs(out - ref)))
    print("KERNEL_OK")
</pallas_src>

<mosaic_0001>
module attributes {stable_mosaic.version = 11 : i64} {
  func.func private @main(%arg0: i32) attributes {dimension_semantics = [#tpu.dimension_semantics<core_parallel>], iteration_bounds = array<i64: 2>, tpu.core_type = #tpu.core_type<sc_scalar_subcore>, window_params = []} {
    return
  }
}

module attributes {stable_mosaic.version = 11 : i64} {
  func.func private @main(%arg0: i32) attributes {dimension_semantics = [#tpu.dimension_semantics<core_parallel>], iteration_bounds = array<i64: 2>, tpu.core_type = #tpu.core_type<sc_scalar_subcore>, window_params = []} {
    return
  }
}

module attributes {stable_mosaic.version = 11 : i64} {
  func.func @merge_kernel(%arg0: i32, %arg1: i32, %arg2: memref<1x4x128xf32, #tpu.memory_space<vmem>>, %arg3: memref<1x8x64xf32, #tpu.memory_space<vmem>>, %arg4: memref<64x128xf32, #tpu.memory_space<vmem>>, %arg5: memref<4x1xf32, #tpu.memory_space<vmem>>, %arg6: memref<4x1xf32, #tpu.memory_space<vmem>>, %arg7: memref<8x4xf32, #tpu.memory_space<vmem>>, %arg8: memref<8x1xf32, #tpu.memory_space<vmem>>, %arg9: memref<1x8x128xf32, #tpu.memory_space<vmem>>, %arg10: memref<1x1x8x1xf32, #tpu.memory_space<vmem>>, %arg11: memref<1x1x8x1xf32, #tpu.memory_space<vmem>>) attributes {dimension_semantics = [#tpu.dimension_semantics<parallel>, #tpu.dimension_semantics<parallel>], iteration_bounds = array<i64: 2, 2>, scalar_prefetch = 0 : i64, scratch_operands = 0 : i64, tpu.core_type = #tpu.core_type<tc>, window_params = [{transform_indices = @transform_0, window_bounds = array<i64: 1, 4, 128>}, {transform_indices = @transform_1, window_bounds = array<i64: 1, 8, 64>}, {transform_indices = @transform_2, window_bounds = array<i64: 64, 128>}, {pipeline_mode = #tpu.pipeline_mode<synchronous>, transform_indices = @transform_3, window_bounds = array<i64: 4, 1>}, {pipeline_mode = #tpu.pipeline_mode<synchronous>, transform_indices = @transform_4, window_bounds = array<i64: 4, 1>}, {pipeline_mode = #tpu.pipeline_mode<synchronous>, transform_indices = @transform_5, window_bounds = array<i64: 8, 4>}, {pipeline_mode = #tpu.pipeline_mode<synchronous>, transform_indices = @transform_6, window_bounds = array<i64: 8, 1>}, {transform_indices = @transform_7, window_bounds = array<i64: 1, 8, 128>}, {transform_indices = @transform_8, window_bounds = array<i64: 1, 1, 8, 1>}, {transform_indices = @transform_9, window_bounds = array<i64: 1, 1, 8, 1>}]} {
    %c0 = arith.constant 0 : index
    %c0_0 = arith.constant 0 : index
    %c0_1 = arith.constant 0 : index
    %0 = vector.load %arg2[%c0, %c0_0, %c0_1] : memref<1x4x128xf32, #tpu.memory_space<vmem>>, vector<1x4x128xf32>
    %1 = vector.shape_cast %0 : vector<1x4x128xf32> to vector<4x128xf32>
    %c0_2 = arith.constant 0 : index
    %c0_3 = arith.constant 0 : index
    %2 = vector.load %arg5[%c0_2, %c0_3] : memref<4x1xf32, #tpu.memory_space<vmem>>, vector<4x1xf32>
    %3 = vector.broadcast %2 : vector<4x1xf32> to vector<4x128xf32>
    %4 = arith.mulf %1, %3 : vector<4x128xf32>
    %c0_4 = arith.constant 0 : index
    %c0_5 = arith.constant 0 : index
    %5 = vector.load %arg6[%c0_4, %c0_5] : memref<4x1xf32, #tpu.memory_space<vmem>>, vector<4x1xf32>
    %6 = vector.broadcast %5 : vector<4x1xf32> to vector<4x128xf32>
    %7 = arith.addf %4, %6 : vector<4x128xf32>
    %cst = arith.constant 0.000000e+00 : f32
    %8 = vector.broadcast %cst : f32 to vector<4x128xf32>
    %9 = arith.maximumf %7, %8 : vector<4x128xf32>
    %c0_6 = arith.constant 0 : index
    %c0_7 = arith.constant 0 : index
    %10 = vector.load %arg7[%c0_6, %c0_7] : memref<8x4xf32, #tpu.memory_space<vmem>>, vector<8x4xf32>
    %11 = arith.truncf %10 : vector<8x4xf32> to vector<8x4xbf16>
    %12 = arith.truncf %9 : vector<4x128xf32> to vector<4x128xbf16>
    %cst_8 = arith.constant dense<0.000000e+00> : vector<8x128xf32>
    %13 = tpu.matmul %11, %12, %cst_8 {dimension_numbers = #tpu.dot_dimension_numbers<[1], [0], [0], [1], [0, 0, 1, 1], [], []>} : vector<8x4xbf16>, vector<4x128xbf16>, vector<8x128xf32> -> vector<8x128xf32>
    %c0_9 = arith.constant 0 : index
    %c0_10 = arith.constant 0 : index
    %14 = vector.load %arg8[%c0_9, %c0_10] : memref<8x1xf32, #tpu.memory_space<vmem>>, vector<8x1xf32>
    %15 = vector.broadcast %14 : vector<8x1xf32> to vector<8x128xf32>
    %16 = arith.addf %13, %15 : vector<8x128xf32>
    %c0_11 = arith.constant 0 : index
    %c0_12 = arith.constant 0 : index
    %c0_13 = arith.constant 0 : index
    %17 = vector.load %arg3[%c0_11, %c0_12, %c0_13] : memref<1x8x64xf32, #tpu.memory_space<vmem>>, vector<1x8x64xf32>
    %18 = vector.shape_cast %17 : vector<1x8x64xf32> to vector<8x64xf32>
    %c0_14 = arith.constant 0 : index
    %c0_15 = arith.constant 0 : index
    %19 = vector.load %arg4[%c0_14, %c0_15] : memref<64x128xf32, #tpu.memory_space<vmem>>, vector<64x128xf32>
    %cst_16 = arith.constant dense<0.000000e+00> : vector<8x128xf32>
    %20 = tpu.matmul %18, %19, %cst_16 {dimension_numbers = #tpu.dot_dimension_numbers<[1], [0], [0], [1], [0, 0, 1, 1], [], []>} : vector<8x64xf32>, vector<64x128xf32>, vector<8x128xf32> -> vector<8x128xf32>
    %21 = arith.addf %20, %16 : vector<8x128xf32>
    %c0_17 = arith.constant 0 : index
    %c0_18 = arith.constant 0 : index
    %c0_19 = arith.constant 0 : index
    %22 = vector.load %arg9[%c0_17, %c0_18, %c0_19] : memref<1x8x128xf32, #tpu.memory_space<vmem>>, vector<1x8x128xf32>
    %23 = vector.shape_cast %22 : vector<1x8x128xf32> to vector<8x128xf32>
    %24 = vector.shape_cast %21 : vector<8x128xf32> to vector<1x8x128xf32>
    tpu.vector_store %arg9[%c0_17, %c0_18, %c0_19], %24 {strides = array<i32>} : memref<1x8x128xf32, #tpu.memory_space<vmem>>, vector<1x8x128xf32>,
    %cst_20 = arith.constant dense<0.000000e+00> : vector<8xf32>
    %25 = vector.multi_reduction <add>, %21, %cst_20 [1] : vector<8x128xf32> to vector<8xf32>
    %26 = vector.shape_cast %25 : vector<8xf32> to vector<8x1xf32>
    %c0_21 = arith.constant 0 : index
    %c0_22 = arith.constant 0 : index
    %c0_23 = arith.constant 0 : index
    %c0_24 = arith.constant 0 : index
    %27 = vector.load %arg10[%c0_21, %c0_22, %c0_23, %c0_24] : memref<1x1x8x1xf32, #tpu.memory_space<vmem>>, vector<1x1x8x1xf32>
    %28 = vector.shape_cast %27 : vector<1x1x8x1xf32> to vector<8x1xf32>
    %29 = vector.shape_cast %26 : vector<8x1xf32> to vector<1x1x8x1xf32>
    tpu.vector_store %arg10[%c0_21, %c0_22, %c0_23, %c0_24], %29 {strides = array<i32>} : memref<1x1x8x1xf32, #tpu.memory_space<vmem>>, vector<1x1x8x1xf32>,
    %30 = arith.mulf %21, %21 : vector<8x128xf32>
    %cst_25 = arith.constant dense<0.000000e+00> : vector<8xf32>
    %31 = vector.multi_reduction <add>, %30, %cst_25 [1] : vector<8x128xf32> to vector<8xf32>
    %32 = vector.shape_cast %31 : vector<8xf32> to vector<8x1xf32>
    %c0_26 = arith.constant 0 : index
    %c0_27 = arith.constant 0 : index
    %c0_28 = arith.constant 0 : index
    %c0_29 = arith.constant 0 : index
    %33 = vector.load %arg11[%c0_26, %c0_27, %c0_28, %c0_29] : memref<1x1x8x1xf32, #tpu.memory_space<vmem>>, vector<1x1x8x1xf32>
    %34 = vector.shape_cast %33 : vector<1x1x8x1xf32> to vector<8x1xf32>
    %35 = vector.shape_cast %32 : vector<8x1xf32> to vector<1x1x8x1xf32>
    tpu.vector_store %arg11[%c0_26, %c0_27, %c0_28, %c0_29], %35 {strides = array<i32>} : memref<1x1x8x1xf32, #tpu.memory_space<vmem>>, vector<1x1x8x1xf32>,
    return
  }
  func.func @transform_0(%arg0: i32, %arg1: i32) -> (i32, i32, i32) {
    %c0_i32 = arith.constant 0 : i32
    %c0_i32_0 = arith.constant 0 : i32
    return %arg0, %c0_i32, %arg1 : i32, i32, i32
  }
  func.func @transform_1(%arg0: i32, %arg1: i32) -> (i32, i32, i32) {
    %c0_i32 = arith.constant 0 : i32
    %c0_i32_0 = arith.constant 0 : i32
    %c0_i32_1 = arith.constant 0 : i32
    return %arg0, %c0_i32, %c0_i32_0 : i32, i32, i32
  }
  func.func @transform_2(%arg0: i32, %arg1: i32) -> (i32, i32) {
    %c0_i32 = arith.constant 0 : i32
    %c0_i32_0 = arith.constant 0 : i32
    return %c0_i32, %arg1 : i32, i32
  }
  func.func @transform_3(%arg0: i32, %arg1: i32) -> (i32, i32) {
    %c0_i32 = arith.constant 0 : i32
    %c0_i32_0 = arith.constant 0 : i32
    %c0_i32_1 = arith.constant 0 : i32
    return %c0_i32, %c0_i32_0 : i32, i32
  }
  func.func @transform_4(%arg0: i32, %arg1: i32) -> (i32, i32) {
    %c0_i32 = arith.constant 0 : i32
    %c0_i32_0 = arith.constant 0 : i32
    %c0_i32_1 = arith.constant 0 : i32
    return %c0_i32, %c0_i32_0 : i32, i32
  }
  func.func @transform_5(%arg0: i32, %arg1: i32) -> (i32, i32) {
    %c0_i32 = arith.constant 0 : i32
    %c0_i32_0 = arith.constant 0 : i32
    %c0_i32_1 = arith.constant 0 : i32
    return %c0_i32, %c0_i32_0 : i32, i32
  }
  func.func @transform_6(%arg0: i32, %arg1: i32) -> (i32, i32) {
    %c0_i32 = arith.constant 0 : i32
    %c0_i32_0 = arith.constant 0 : i32
    %c0_i32_1 = arith.constant 0 : i32
    return %c0_i32, %c0_i32_0 : i32, i32
  }
  func.func @transform_7(%arg0: i32, %arg1: i32) -> (i32, i32, i32) {
    %c0_i32 = arith.constant 0 : i32
    %c0_i32_0 = arith.constant 0 : i32
    return %arg0, %c0_i32, %arg1 : i32, i32, i32
  }
  func.func @transform_8(%arg0: i32, %arg1: i32) -> (i32, i32, i32, i32) {
    %c0_i32 = arith.constant 0 : i32
    %c0_i32_0 = arith.constant 0 : i32
    %c0_i32_1 = arith.constant 0 : i32
    return %arg0, %arg1, %c0_i32, %c0_i32_0 : i32, i32, i32, i32
  }
  func.func @transform_9(%arg0: i32, %arg1: i32) -> (i32, i32, i32, i32) {
    %c0_i32 = arith.constant 0 : i32
    %c0_i32_0 = arith.constant 0 : i32
    %c0_i32_1 = arith.constant 0 : i32
    return %arg0, %arg1, %c0_i32, %c0_i32_0 : i32, i32, i32, i32
  }
}

module attributes {stable_mosaic.version = 11 : i64} {
  func.func @conv3x3_kernel(%arg0: i32, %arg1: memref<1x8x256xf32, #tpu.memory_space<vmem>>, %arg2: memref<8x1xf32, #tpu.memory_space<vmem>>, %arg3: memref<8x1xf32, #tpu.memory_space<vmem>>, %arg4: memref<9x8x8xf32, #tpu.memory_space<vmem>>, %arg5: memref<8x1xf32, #tpu.memory_space<vmem>>, %arg6: memref<2x256xf32, #tpu.memory_space<vmem>>, %arg7: memref<1x8x256xf32, #tpu.memory_space<vmem>>) attributes {dimension_semantics = [#tpu.dimension_semantics<parallel>], iteration_bounds = array<i64: 2>, scalar_prefetch = 0 : i64, scratch_operands = 0 : i64, tpu.core_type = #tpu.core_type<tc>, window_params = [{transform_indices = @transform_0, window_bounds = array<i64: 1, 8, 256>}, {pipeline_mode = #tpu.pipeline_mode<synchronous>, transform_indices = @transform_1, window_bounds = array<i64: 8, 1>}, {pipeline_mode = #tpu.pipeline_mode<synchronous>, transform_indices = @transform_2, window_bounds = array<i64: 8, 1>}, {pipeline_mode = #tpu.pipeline_mode<synchronous>, transform_indices = @transform_3, window_bounds = array<i64: 9, 8, 8>}, {pipeline_mode = #tpu.pipeline_mode<synchronous>, transform_indices = @transform_4, window_bounds = array<i64: 8, 1>}, {pipeline_mode = #tpu.pipeline_mode<synchronous>, transform_indices = @transform_5, window_bounds = array<i64: 2, 256>}, {transform_indices = @transform_6, window_bounds = array<i64: 1, 8, 256>}]} {
    %c0 = arith.constant 0 : index
    %c0_0 = arith.constant 0 : index
    %c0_1 = arith.constant 0 : index
    %0 = vector.load %arg1[%c0, %c0_0, %c0_1] : memref<1x8x256xf32, #tpu.memory_space<vmem>>, vector<1x8x256xf32>
    %1 = vector.shape_cast %0 : vector<1x8x256xf32> to vector<8x256xf32>
    %c0_2 = arith.constant 0 : index
    %c0_3 = arith.constant 0 : index
    %2 = vector.load %arg2[%c0_2, %c0_3] : memref<8x1xf32, #tpu.memory_space<vmem>>, vector<8x1xf32>
    %3 = vector.broadcast %2 : vector<8x1xf32> to vector<8x256xf32>
    %4 = arith.mulf %1, %3 : vector<8x256xf32>
    %c0_4 = arith.constant 0 : index
    %c0_5 = arith.constant 0 : index
    %5 = vector.load %arg3[%c0_4, %c0_5] : memref<8x1xf32, #tpu.memory_space<vmem>>, vector<8x1xf32>
    %6 = vector.broadcast %5 : vector<8x1xf32> to vector<8x256xf32>
    %7 = arith.addf %4, %6 : vector<8x256xf32>
    %cst = arith.constant 0.000000e+00 : f32
    %8 = vector.broadcast %cst : f32 to vector<8x256xf32>
    %9 = arith.maximumf %7, %8 : vector<8x256xf32>
    %cst_6 = arith.constant 0.000000e+00 : f32
    %10 = vector.broadcast %cst_6 : f32 to vector<8x17xf32>
    %11 = tpu.concatenate %10, %9, %10 in 1 : vector<8x17xf32>, vector<8x256xf32>, vector<8x17xf32> -> vector<8x290xf32>
    %12 = arith.truncf %11 : vector<8x290xf32> to vector<8x290xbf16>
    %c0_7 = arith.constant 0 : index
    %c0_8 = arith.constant 0 : index
    %13 = vector.load %arg6[%c0_7, %c0_8] : memref<2x256xf32, #tpu.memory_space<vmem>>, vector<2x256xf32>
    %14 = arith.truncf %13 : vector<2x256xf32> to vector<2x256xbf16>
    %15 = vector.extract_strided_slice %14 {offsets = [0, 0], sizes = [1, 256], strides = [1, 1]} : vector<2x256xbf16> to vector<1x256xbf16>
    %16 = vector.extract_strided_slice %14 {offsets = [1, 0], sizes = [1, 256], strides = [1, 1]} : vector<2x256xbf16> to vector<1x256xbf16>
    %c0_9 = arith.constant 0 : index
    %c0_10 = arith.constant 0 : index
    %c0_11 = arith.constant 0 : index
    %17 = vector.load %arg4[%c0_9, %c0_10, %c0_11] : memref<9x8x8xf32, #tpu.memory_space<vmem>>, vector<9x8x8xf32>
    %18 = arith.truncf %17 : vector<9x8x8xf32> to vector<9x8x8xbf16>
    %c0_12 = arith.constant 0 : index
    %c0_13 = arith.constant 0 : index
    %19 = vector.load %arg5[%c0_12, %c0_13] : memref<8x1xf32, #tpu.memory_space<vmem>>, vector<8x1xf32>
    %cst_14 = arith.constant 0.000000e+00 : f32
    %20 = vector.broadcast %cst_14 : f32 to vector<8x256xf32>
    %21 = vector.broadcast %19 : vector<8x1xf32> to vector<8x256xf32>
    %22 = arith.addf %21, %20 : vector<8x256xf32>
    %23 = vector.extract_strided_slice %12 {offsets = [0, 0], sizes = [8, 256], strides = [1, 1]} : vector<8x290xbf16> to vector<8x256xbf16>
    %24 = vector.broadcast %15 : vector<1x256xbf16> to vector<8x256xbf16>
    %25 = arith.mulf %23, %24 : vector<8x256xbf16>
    %26 = vector.extract_strided_slice %18 {offsets = [0, 0, 0], sizes = [1, 8, 8], strides = [1, 1, 1]} : vector<9x8x8xbf16> to vector<1x8x8xbf16>
    %27 = vector.shape_cast %26 : vector<1x8x8xbf16> to vector<8x8xbf16>
    %cst_15 = arith.constant dense<0.000000e+00> : vector<8x256xf32>
    %28 = tpu.matmul %27, %25, %cst_15 {dimension_numbers = #tpu.dot_dimension_numbers<[1], [0], [0], [1], [0, 0, 1, 1], [], []>} : vector<8x8xbf16>, vector<8x256xbf16>, vector<8x256xf32> -> vector<8x256xf32>
    %29 = arith.addf %22, %28 : vector<8x256xf32>
    %30 = vector.extract_strided_slice %12 {offsets = [0, 1], sizes = [8, 256], strides = [1, 1]} : vector<8x290xbf16> to vector<8x256xbf16>
    %31 = vector.extract_strided_slice %18 {offsets = [1, 0, 0], sizes = [1, 8, 8], strides = [1, 1, 1]} : vector<9x8x8xbf16> to vector<1x8x8xbf16>
    %32 = vector.shape_cast %31 : vector<1x8x8xbf16> to vector<8x8xbf16>
    %cst_16 = arith.constant dense<0.000000e+00> : vector<8x256xf32>
    %33 = tpu.matmul %32, %30, %cst_16 {dimension_numbers = #tpu.dot_dimension_numbers<[1], [0], [0], [1], [0, 0, 1, 1], [], []>} : vector<8x8xbf16>, vector<8x256xbf16>, vector<8x256xf32> -> vector<8x256xf32>
    %34 = arith.addf %29, %33 : vector<8x256xf32>
    %35 = vector.extract_strided_slice %12 {offsets = [0, 2], sizes = [8, 256], strides = [1, 1]} : vector<8x290xbf16> to vector<8x256xbf16>
    %36 = vector.broadcast %16 : vector<1x256xbf16> to vector<8x256xbf16>
    %37 = arith.mulf %35, %36 : vector<8x256xbf16>
    %38 = vector.extract_strided_slice %18 {offsets = [2, 0, 0], sizes = [1, 8, 8], strides = [1, 1, 1]} : vector<9x8x8xbf16> to vector<1x8x8xbf16>
    %39 = vector.shape_cast %38 : vector<1x8x8xbf16> to vector<8x8xbf16>
    %cst_17 = arith.constant dense<0.000000e+00> : vector<8x256xf32>
    %40 = tpu.matmul %39, %37, %cst_17 {dimension_numbers = #tpu.dot_dimension_numbers<[1], [0], [0], [1], [0, 0, 1, 1], [], []>} : vector<8x8xbf16>, vector<8x256xbf16>, vector<8x256xf32> -> vector<8x256xf32>
    %41 = arith.addf %34, %40 : vector<8x256xf32>
    %42 = vector.extract_strided_slice %12 {offsets = [0, 16], sizes = [8, 256], strides = [1, 1]} : vector<8x290xbf16> to vector<8x256xbf16>
    %43 = vector.broadcast %15 : vector<1x256xbf16> to vector<8x256xbf16>
    %44 = arith.mulf %42, %43 : vector<8x256xbf16>
    %45 = vector.extract_strided_slice %18 {offsets = [3, 0, 0], sizes = [1, 8, 8], strides = [1, 1, 1]} : vector<9x8x8xbf16> to vector<1x8x8xbf16>
    %46 = vector.shape_cast %45 : vector<1x8x8xbf16> to vector<8x8xbf16>
    %cst_18 = arith.constant dense<0.000000e+00> : vector<8x256xf32>
    %47 = tpu.matmul %46, %44, %cst_18 {dimension_numbers = #tpu.dot_dimension_numbers<[1], [0], [0], [1], [0, 0, 1, 1], [], []>} : vector<8x8xbf16>, vector<8x256xbf16>, vector<8x256xf32> -> vector<8x256xf32>
    %48 = arith.addf %41, %47 : vector<8x256xf32>
    %49 = vector.extract_strided_slice %12 {offsets = [0, 17], sizes = [8, 256], strides = [1, 1]} : vector<8x290xbf16> to vector<8x256xbf16>
    %50 = vector.extract_strided_slice %18 {offsets = [4, 0, 0], sizes = [1, 8, 8], strides = [1, 1, 1]} : vector<9x8x8xbf16> to vector<1x8x8xbf16>
    %51 = vector.shape_cast %50 : vector<1x8x8xbf16> to vector<8x8xbf16>
    %cst_19 = arith.constant dense<0.000000e+00> : vector<8x256xf32>
    %52 = tpu.matmul %51, %49, %cst_19 {dimension_numbers = #tpu.dot_dimension_numbers<[1], [0], [0], [1], [0, 0, 1, 1], [], []>} : vector<8x8xbf16>, vector<8x256xbf16>, vector<8x256xf32> -> vector<8x256xf32>
    %53 = arith.addf %48, %52 : vector<8x256xf32>
    %54 = vector.extract_strided_slice %12 {offsets = [0, 18], sizes = [8, 256], strides = [1, 1]} : vector<8x290xbf16> to vector<8x256xbf16>
    %55 = vector.broadcast %16 : vector<1x256xbf16> to vector<8x256xbf16>
    %56 = arith.mulf %54, %55 : vector<8x256xbf16>
    %57 = vector.extract_strided_slice %18 {offsets = [5, 0, 0], sizes = [1, 8, 8], strides = [1, 1, 1]} : vector<9x8x8xbf16> to vector<1x8x8xbf16>
    %58 = vector.shape_cast %57 : vector<1x8x8xbf16> to vector<8x8xbf16>
    %cst_20 = arith.constant dense<0.000000e+00> : vector<8x256xf32>
    %59 = tpu.matmul %58, %56, %cst_20 {dimension_numbers = #tpu.dot_dimension_numbers<[1], [0], [0], [1], [0, 0, 1, 1], [], []>} : vector<8x8xbf16>, vector<8x256xbf16>, vector<8x256xf32> -> vector<8x256xf32>
    %60 = arith.addf %53, %59 : vector<8x256xf32>
    %61 = vector.extract_strided_slice %12 {offsets = [0, 32], sizes = [8, 256], strides = [1, 1]} : vector<8x290xbf16> to vector<8x256xbf16>
    %62 = vector.broadcast %15 : vector<1x256xbf16> to vector<8x256xbf16>
    %63 = arith.mulf %61, %62 : vector<8x256xbf16>
    %64 = vector.extract_strided_slice %18 {offsets = [6, 0, 0], sizes = [1, 8, 8], strides = [1, 1, 1]} : vector<9x8x8xbf16> to vector<1x8x8xbf16>
    %65 = vector.shape_cast %64 : vector<1x8x8xbf16> to vector<8x8xbf16>
    %cst_21 = arith.constant dense<0.000000e+00> : vector<8x256xf32>
    %66 = tpu.matmul %65, %63, %cst_21 {dimension_numbers = #tpu.dot_dimension_numbers<[1], [0], [0], [1], [0, 0, 1, 1], [], []>} : vector<8x8xbf16>, vector<8x256xbf16>, vector<8x256xf32> -> vector<8x256xf32>
    %67 = arith.addf %60, %66 : vector<8x256xf32>
    %68 = vector.extract_strided_slice %12 {offsets = [0, 33], sizes = [8, 256], strides = [1, 1]} : vector<8x290xbf16> to vector<8x256xbf16>
    %69 = vector.extract_strided_slice %18 {offsets = [7, 0, 0], sizes = [1, 8, 8], strides = [1, 1, 1]} : vector<9x8x8xbf16> to vector<1x8x8xbf16>
    %70 = vector.shape_cast %69 : vector<1x8x8xbf16> to vector<8x8xbf16>
    %cst_22 = arith.constant dense<0.000000e+00> : vector<8x256xf32>
    %71 = tpu.matmul %70, %68, %cst_22 {dimension_numbers = #tpu.dot_dimension_numbers<[1], [0], [0], [1], [0, 0, 1, 1], [], []>} : vector<8x8xbf16>, vector<8x256xbf16>, vector<8x256xf32> -> vector<8x256xf32>
    %72 = arith.addf %67, %71 : vector<8x256xf32>
    %73 = vector.extract_strided_slice %12 {offsets = [0, 34], sizes = [8, 256], strides = [1, 1]} : vector<8x290xbf16> to vector<8x256xbf16>
    %74 = vector.broadcast %16 : vector<1x256xbf16> to vector<8x256xbf16>
    %75 = arith.mulf %73, %74 : vector<8x256xbf16>
    %76 = vector.extract_strided_slice %18 {offsets = [8, 0, 0], sizes = [1, 8, 8], strides = [1, 1, 1]} : vector<9x8x8xbf16> to vector<1x8x8xbf16>
    %77 = vector.shape_cast %76 : vector<1x8x8xbf16> to vector<8x8xbf16>
    %cst_23 = arith.constant dense<0.000000e+00> : vector<8x256xf32>
    %78 = tpu.matmul %77, %75, %cst_23 {dimension_numbers = #tpu.dot_dimension_numbers<[1], [0], [0], [1], [0, 0, 1, 1], [], []>} : vector<8x8xbf16>, vector<8x256xbf16>, vector<8x256xf32> -> vector<8x256xf32>
    %79 = arith.addf %72, %78 : vector<8x256xf32>
    %c0_24 = arith.constant 0 : index
    %c0_25 = arith.constant 0 : index
    %c0_26 = arith.constant 0 : index
    %80 = vector.load %arg7[%c0_24, %c0_25, %c0_26] : memref<1x8x256xf32, #tpu.memory_space<vmem>>, vector<1x8x256xf32>
    %81 = vector.shape_cast %80 : vector<1x8x256xf32> to vector<8x256xf32>
    %82 = vector.shape_cast %79 : vector<8x256xf32> to vector<1x8x256xf32>
    tpu.vector_store %arg7[%c0_24, %c0_25, %c0_26], %82 {strides = array<i32>} : memref<1x8x256xf32, #tpu.memory_space<vmem>>, vector<1x8x256xf32>,
    return
  }
  func.func @transform_0(%arg0: i32) -> (i32, i32, i32) {
    %c0_i32 = arith.constant 0 : i32
    %c0_i32_0 = arith.constant 0 : i32
    %c0_i32_1 = arith.constant 0 : i32
    return %arg0, %c0_i32, %c0_i32_0 : i32, i32, i32
  }
  func.func @transform_1(%arg0: i32) -> (i32, i32) {
    %c0_i32 = arith.constant 0 : i32
    %c0_i32_0 = arith.constant 0 : i32
    %c0_i32_1 = arith.constant 0 : i32
    return %c0_i32, %c0_i32_0 : i32, i32
  }
  func.func @transform_2(%arg0: i32) -> (i32, i32) {
    %c0_i32 = arith.constant 0 : i32
    %c0_i32_0 = arith.constant 0 : i32
    %c0_i32_1 = arith.constant 0 : i32
    return %c0_i32, %c0_i32_0 : i32, i32
  }
  func.func @transform_3(%arg0: i32) -> (i32, i32, i32) {
    %c0_i32 = arith.constant 0 : i32
    %c0_i32_0 = arith.constant 0 : i32
    %c0_i32_1 = arith.constant 0 : i32
    %c0_i32_2 = arith.constant 0 : i32
    return %c0_i32, %c0_i32_0, %c0_i32_1 : i32, i32, i32
  }
  func.func @transform_4(%arg0: i32) -> (i32, i32) {
    %c0_i32 = arith.constant 0 : i32
    %c0_i32_0 = arith.constant 0 : i32
    %c0_i32_1 = arith.constant 0 : i32
    return %c0_i32, %c0_i32_0 : i32, i32
  }
  func.func @transform_5(%arg0: i32) -> (i32, i32) {
    %c0_i32 = arith.constant 0 : i32
    %c0_i32_0 = arith.constant 0 : i32
    %c0_i32_1 = arith.constant 0 : i32
    return %c0_i32, %c0_i32_0 : i32, i32
  }
  func.func @transform_6(%arg0: i32) -> (i32, i32, i32) {
    %c0_i32 = arith.constant 0 : i32
    %c0_i32_0 = arith.constant 0 : i32
    %c0_i32_1 = arith.constant 0 : i32
    return %arg0, %c0_i32, %c0_i32_0 : i32, i32, i32
  }
}

</mosaic_0001>

<bundles_post_ra>
// kernel: ladder_forward.2
= control target key start
LH: loop header
LB: loop body
LE: loop exit
PB: predicated region body
PF: predicated region fallthrough
CT: control target
= control target key end

     0   :  { %s1121_s30 = smov 0   ;;  %s1123_s10 = smov 0   ;;  %s1233_s0 = inlined_call_operand.vmem [shape: f32[2,4,256], index: 0, kind: input, shape index: {}]   ;;  %s1234_s1 = inlined_call_operand.vmem [shape: f32[2,8,64], index: 1, kind: input, shape index: {}]   ;;  %s1235_s2 = inlined_call_operand.vmem [shape: f32[64,256], index: 2, kind: input, shape index: {}]   ;;  %s1236_s3 = inlined_call_operand.vmem [shape: f32[4,1], index: 3, kind: input, shape index: {}]   ;;  %s1237_s4 = inlined_call_operand.vmem [shape: f32[4,1], index: 4, kind: input, shape index: {}]   ;;  %s1238_s5 = inlined_call_operand.vmem [shape: f32[8,4], index: 5, kind: input, shape index: {}]   ;;  %s1239_s6 = inlined_call_operand.vmem [shape: f32[8,1], index: 6, kind: input, shape index: {}]   ;;  %s1240_s7 = inlined_call_operand.vmem [shape: f32[2,8,256], index: 7, kind: output, shape index: {0}]   ;;  %s1241_s8 = inlined_call_operand.vmem [shape: f32[2,2,8,1], index: 8, kind: output, shape index: {1}]   ;;  %s1242_s9 = inlined_call_operand.vmem [shape: f32[2,2,8,1], index: 9, kind: output, shape index: {2}]  }
   0x1   :  { %s1125_s11 = smov 0   ;;  %s1127_s12 = smov 0  }
   0x2   :  { %s1129_s13 = smov 0   ;;  %s1131_s14 = smov 0  }
   0x3   :  { %s1133_s15 = smov 0  }
   0x4 LB: > { %s29_s16 = sadd.s32 1, %s1057_s13  ;;  %s32_s17 = sadd.s32 1, %s1061_s14  ;;  %s1065_s15 = sphi %s1133_s15, %s20_s15   ;;  %s1061_s14 = sphi %s1131_s14, %s1248_s14   ;;  %s1057_s13 = sphi %s1129_s13, %s1247_s13   ;;  %s1053_s12 = sphi %s1127_s12, %s1246_s12   ;;  %s1049_s11 = sphi %s1125_s11, %s1245_s11   ;;  %s1045_s10 = sphi %s1123_s10, %s1244_s10   ;;  %s1041_s30 = sphi %s1121_s30, %s1243_s30  }
   0x5   : > { %p30_p0 = scmp.ge.s32.totalorder %s29_s16, 2  ;;  %s93_s18 = sadd.s32 1, %s1045_s10 }
   0x6   : > { %p100_p1 = scmp.ne.s32.totalorder %s1045_s10, %s1041_s30  ;;  %p101_p2 = scmp.eq.s32.totalorder %s1065_s15, 0 }
   0x7   : > { %s1250_s16 = smov (%p30_p0, %s29_s16), 0  ;;  %s1252_s17 = smov (!%p30_p0, %s32_s17), %s1061_s14 }
   0x8   : > { %s90_s19 = ssub.s32 %s1057_s13, %s1250_s16  ;;  %p102_p3 = por %p101_p2, %p100_p1 }
   0x9   : > { %p34_p4 = scmp.ge.s32.totalorder %s1252_s17, 2  ;;  %p91_p5 = scmp.eq.s32.totalorder %s90_s19, 0 }
   0xa   : > { %p883_p6 = scmp.ge.s32.totalorder %s1065_s15, 4 }
   0xb   : > { %s1254_s17 = smov (%p34_p4, %s1252_s17), 0 }
   0xc   : > { %s1170_s20 = scalar_select %p91_p5, %s1045_s10, %s93_s18  }
   0xd   : > { %306 = sbr.rel (%p883_p6) target bundleno = 28 (0x1c), region = 32 }
  0x14   : > { %327 = sbr.rel (!%p102_p3) target bundleno = 28 (0x1c), region = 44  ;;  %s329_s21 = sand.u32 (%p102_p3), 1, %s1045_s10  }
  0x15   : > { %s885_s22 = sshll.u32 (%p102_p3), %s1057_s13, 3  ;;  %s884_s23 = sshll.u32 (%p102_p3), %s329_s21, 6 }
  0x16   : > { %s333_s26 = scalar_lea.vmem (%p102_p3), %s1235_s2, %s885_s22  ;;  %s331_s27 = scalar_lea.vmem (%p102_p3), [#allocation2], %s884_s23 }
  0x17   : > { %v375_v0 = vld [vmem:[%s333_s26] sm:$0xff] (%p102_p3)  ;;  %v377_v1 = vld [vmem:[%s333_s26 + $0x10] sm:$0xff] (%p102_p3) }
  0x18   : > { %v379_v2 = vld [vmem:[%s333_s26 + $0x20] sm:$0xff] (%p102_p3)  ;;  %376 = vst [vmem:[%s331_s27] sm:$0xff] (%p102_p3), %v375_v0  ;;  %378 = vst [vmem:[%s331_s27 + $0x8] sm:$0xff] (%p102_p3), %v377_v1  ;;  %v381_v3 = vld [vmem:[%s333_s26 + $0x30] sm:$0xff] (%p102_p3) }
  0x19   : > { %380 = vst [vmem:[%s331_s27 + $0x10] sm:$0xff] (%p102_p3), %v379_v2  ;;  %v383_v4 = vld [vmem:[%s333_s26 + $0x40] sm:$0xff] (%p102_p3)  ;;  %v385_v5 = vld [vmem:[%s333_s26 + $0x50] sm:$0xff] (%p102_p3)  ;;  %382 = vst [vmem:[%s331_s27 + $0x18] sm:$0xff] (%p102_p3), %v381_v3 }
  0x1a   : > { %384 = vst [vmem:[%s331_s27 + $0x20] sm:$0xff] (%p102_p3), %v383_v4  ;;  %386 = vst [vmem:[%s331_s27 + $0x28] sm:$0xff] (%p102_p3), %v385_v5  ;;  %v387_v6 = vld [vmem:[%s333_s26 + $0x60] sm:$0xff] (%p102_p3)  ;;  %v389_v7 = vld [vmem:[%s333_s26 + $0x70] sm:$0xff] (%p102_p3) }
  0x1b   : > { %388 = vst [vmem:[%s331_s27 + $0x30] sm:$0xff] %v387_v6  ;;  %390 = vst [vmem:[%s331_s27 + $0x38] sm:$0xff] %v389_v7 }
  0x1c PF: > { %p886_p7 = scmp.ge.s32.totalorder %s1065_s15, 1  ;;  %p395_p8 = scmp.lt.s32.totalorder %s1065_s15, 5 }
  0x1e   : > { %p396_p9 = pnand %p886_p7, %p395_p8 }
  0x1f   : > { %v506_v8 = vld [vmem:[%s1236_s3] sm:$0xf] (!%p396_p9)  ;;  %v1067_v9 = vmov (!%p396_p9), 0   ;;  %v1068_v10 = vmov (!%p396_p9), 0.0|0.0   ;;  %s402_s18 = sand.u32 (!%p396_p9), 1, %s1041_s30   ;;  %p468_p10 = scmp.lt.s32.totalorder (!%p396_p9), %s1053_s12, 1 }
  0x20   : > { %399 = sbr.rel (%p396_p9) target bundleno = 536 (0x218), region = 82  ;;  %1009 = vset.pattern.permute.xlu0 (!%p396_p9), %v1067_v9  ;;  %937 = vmatprep.subr.bf16.mxu1 (!%p396_p9), %v1068_v10  ;;  %v513_v11 = vld [vmem:[%s1237_s4] sm:$0xf] (!%p396_p9)  ;;  %s887_s22 = sshll.u32 (!%p396_p9), %s402_s18, 6  ;;  %v1069_v20 = vmov (!%p396_p9), 0.0   ;;  %vm1070_vm0 = vmmov (!%p396_p9), 0  }
  0x21   : > { %509 = vperm.xlu0 (!%p396_p9), %1009, %v506_v8   ;;  %1010 = vset.pattern.permute.xlu1 (!%p396_p9), %v1067_v9  ;;  %s404_s23 = scalar_lea.vmem (!%p396_p9), [#allocation2], %s887_s22  ;;  %v524_v24 = vld [vmem:[%s1239_s6] sm:$0xff] (!%p396_p9)  ;;  %vm587_vm1 = vcmask (!%p396_p9), 523264   ;;  %p470_p11 = scmp.lt.s32.totalorder (!%p396_p9), %s1049_s11, 1  ;;  %vm534_vm2 = vcmask (!%p396_p9), 1041408   ;;  %vm530_vm3 = vcmask (!%p396_p9), 31744  }
  0x22   : > { %v579_v12 = vld [vmem:[%s404_s23] sm:$0xff] (!%p396_p9)  ;;  %v580_v13 = vld [vmem:[%s404_s23 + $0x8] sm:$0xff] (!%p396_p9)  ;;  %v581_v14 = vld [vmem:[%s404_s23 + $0x10] sm:$0xff] (!%p396_p9)  ;;  %912 = vmatprep.subr.bf16.mxu0 (!%p396_p9), %v1069_v20  ;;  %914 = vmatprep.mubr.msk.bf16.mxu0 (!%p396_p9), %vm1070_vm0, %v1069_v20  ;;  %vm664_vm4 = vcmask (!%p396_p9), 7168  }
  0x23   : > { %v938_v15 = vpack.c.bf16 (!%p396_p9), %v580_v13, %v579_v12  ;;  %v582_v16 = vld [vmem:[%s404_s23 + $0x18] sm:$0xff] (!%p396_p9)  ;;  %v583_v18 = vld [vmem:[%s404_s23 + $0x20] sm:$0xff] (!%p396_p9)  ;;  %v584_v19 = vld [vmem:[%s404_s23 + $0x28] sm:$0xff] (!%p396_p9)  ;;  %934 = vmatprep.mubr.msk.f32.mxu1 (!%p396_p9), %vm1070_vm0, %v1069_v20  ;;  %527 = vperm.xlu1 (!%p396_p9), %1010, %v524_v24  }
  0x24   : > { %v941_v17 = vpack.c.bf16 (!%p396_p9), %v582_v16, %v581_v14  ;;  %v944_v21 = vpack.c.bf16 (!%p396_p9), %v584_v19, %v583_v18  ;;  %v585_v22 = vld [vmem:[%s404_s23 + $0x30] sm:$0xff] (!%p396_p9)  ;;  %v586_v23 = vld [vmem:[%s404_s23 + $0x38] sm:$0xff] (!%p396_p9)  ;;  %v521_v33 = vld [vmem:[%s1238_s5] sm:$0xff] (!%p396_p9) }
  0x25   : > { %516 = vperm.xlu0 (!%p396_p9), %1009, %v513_v11   ;;  %939 = vmatpush3.bf16.msra.mxu1 (!%p396_p9), %v938_v15  ;;  %v947_v25 = vpack.c.bf16 (!%p396_p9), %v586_v23, %v585_v22  ;;  %v522_v36 = vpack.c.bf16 (!%p396_p9), %v521_v33, %v521_v33 }
  0x26   : > { %940 = vmatprep.subr.bf16.mxu1 (!%p396_p9), %v1068_v10 }
  0x27   : > { %s1256_s12 = smov (!%p468_p10, %s1053_s12), 1  ;;  %s1258_s11 = smov (!%p470_p11, %s1049_s11), 1 }
  0x28   : > { %s890_s30 = sshll.u32 %s1256_s12, 3  ;;  %s888_s29 = sshll.u32 %s1256_s12, 1 }
  0x29   : > { %942 = vmatpush3.bf16.msra.mxu1 %v941_v17  ;;  %s479_s28 = scalar_lea.vmem %s1234_s1, %s890_s30  ;;  %s473_s18 = sadd.s32 %s888_s29, %s1258_s11 }
  0x2a   : > { %943 = vmatprep.subr.bf16.mxu1 %v1068_v10  ;;  %v578_v26 = vld [vmem:[%s479_s28] sm:$0xff]  ;;  %s889_s19 = sshll.u32 %s473_s18, 2  ;;  %s892_s11 = sshll.u32 %s473_s18, 3 }
  0x2b   : > { %s475_s23 = scalar_lea.vmem %s1233_s0, %s889_s19  ;;  %s487_s26 = scalar_lea.vmem %s1240_s7, %s892_s11 }
  0x2c   : > { %v505_v28 = vld [vmem:[%s475_s23] sm:$0xf]  ;;  %s495_s29 = scalar_lea.vmem %s1241_s8, %s892_s11  ;;  %s503_s21 = scalar_lea.vmem %s1242_s9, %s892_s11 }
  0x2d   : > { %945 = vmatpush3.bf16.msra.mxu1 %v944_v21 }
  0x2e   : > { %946 = vmatprep.subr.bf16.mxu1 %v1068_v10 }
  0x31   : > { %948 = vmatpush3.bf16.msra.mxu1 %v947_v25 }
  0x34   : > { %935 = vmatmul.mubr.msk.f32.vlgmr.msra.gmra.mrb[0].mxu1 %vm587_vm1, %v578_v26 }
  0xa0   : > { %v510_v27 = vpop.permute.xlu0 %509 }
  0xa1   : > { %v512_v29 = vmul.f32 %v510_v27, %v505_v28 }
  0xa2   : > { %v528_v39 = vpop.permute.xlu1 %527 }
  0xa4   : > { %v517_v30 = vpop.permute.xlu0 %516 }
  0xa5   : > { %v519_v31 = vadd.f32 %v517_v30, %v512_v29 }
  0xa7   : > { %v520_v32 = vmax.f32 %v519_v31, 0.0 }
  0xa9   : > { %v523_v34 = vpack.c.bf16 %v520_v32, %v520_v32 }
  0xab   : > { %v536_v35 = vsel %vm534_vm2, %v523_v34, 0 }
  0xac   : > { %913 = vmatpush3.bf16.msra.mxu0 %v536_v35 }
  0xaf   : > { %915 = vmatmul.mubr.msk.bf16.vlgmr.msra.gmra.mrb[0].mxu0 %vm530_vm3, %v522_v36 }
 0x107   : > { %v657_v37 = vpop.f32.mrb[0].mxu1 }
 0x108   : > { %v936_v38 = vpop.f32.mrb[1].mxu1 }
 0x182   : > { %v572_v40 = vpop.f32.mrb[0].mxu0 }
 0x183   : > { %v573_v41 = vadd.f32 %v572_v40, %v528_v39  ;;  %v916_v42 = vpop.f32.mrb[1].mxu0 }
 0x184   : > { %v575_v43 = vpop.f32.mrb[2].mxu0 }
 0x185   : > { %v658_v44 = vadd.f32 %v657_v37, %v573_v41  ;;  %v917_v45 = vpop.f32.mrb[3].mxu0 }
 0x187   : > { %661 = vst [vmem:[%s487_s26] sm:$0xff] %v658_v44  ;;  %662 = vadd.xlane.f32.xlu1 %v658_v44  ;;  %v666_v46 = vmul.f32 %v658_v44, %v658_v44 }
 0x189   : > { %667 = vadd.xlane.f32.xlu0 %v666_v46 }
 0x214   : > { %v663_v47 = vpop.xlane.xlu1 %662 }
 0x215   : > { %665 = vst.msk [vmem:[%s495_s29] sm:$0xff] %vm664_vm4, %v663_v47 }
 0x216   : > { %v668_v48 = vpop.xlane.xlu0 %667 }
 0x217   : > { %669 = vst.msk [vmem:[%s503_s21] sm:$0xff] %vm664_vm4, %v668_v48 }
 0x218 PF: > { %s20_s15 = sadd.s32 1, %s1065_s15   ;;  %s1243_s30 = smov %s1045_s10 }
 0x219   : > { %p17_p12 = scmp.ge.s32.totalorder %s20_s15, 6   ;;  %s1244_s10 = smov %s1170_s20 }
 0x21a   : > { %s1245_s11 = smov %s1057_s13  ;;  %s1246_s12 = smov %s1061_s14 }
 0x21b   : > { %s1247_s13 = smov %s1250_s16  ;;  %s1248_s14 = smov %s1254_s17 }
 0x21c   :  { %19 = sbr.rel (!%p17_p12) target bundleno = 4 (0x4), region = 151 }

// kernel: ladder_forward.3
= control target key start
LH: loop header
LB: loop body
LE: loop exit
PB: predicated region body
PF: predicated region fallthrough
CT: control target
= control target key end

     0   :  { %s1191_s21 = smov 0   ;;  %s1330_s0 = inlined_call_operand.vmem [shape: f32[2,8,256], index: 0, kind: input, shape index: {}]   ;;  %s1331_s1 = inlined_call_operand.vmem [shape: f32[8,1], index: 1, kind: input, shape index: {}]   ;;  %s1332_s2 = inlined_call_operand.vmem [shape: f32[8,1], index: 2, kind: input, shape index: {}]   ;;  %s1333_s3 = inlined_call_operand.vmem [shape: f32[9,8,8], index: 3, kind: input, shape index: {}]   ;;  %s1334_s4 = inlined_call_operand.vmem [shape: f32[8,1], index: 4, kind: input, shape index: {}]   ;;  %s1335_s5 = inlined_call_operand.vmem [shape: f32[2,256], index: 5, kind: input, shape index: {}]   ;;  %s1336_s6 = inlined_call_operand.vmem [shape: f32[2,8,256], index: 6, kind: output, shape index: {}]  }
   0x1 LB: > { %s1039_s22 = sadd.s32 4294967295, %s1139_s21   ;;  %p1043_p0 = scmp.ge.s32.totalorder %s1139_s21, 1  ;;  %s1139_s21 = sphi %s1191_s21, %s16_s21  }
   0x2   : > { %p212_p1 = scmp.lt.s32.totalorder %s1139_s21, 3 }
   0x4   : > { %p213_p2 = pnand %p1043_p0, %p212_p1 }
   0x5   : > { %v255_v0 = vld [vmem:[%s1331_s1] sm:$0xff] (!%p213_p2)  ;;  %v331_v1 = vlaneseq (!%p213_p2)  ;;  %v1141_v2 = vmov (!%p213_p2), 0   ;;  %s1142_s29 = smov (!%p213_p2), 18   ;;  %s1143_s30 = smov (!%p213_p2), 32   ;;  %vm279_vm0 = vcmask (!%p213_p2), 138240   ;;  %vm697_vm1 = vcmask (!%p213_p2), 146432  }
   0x6   : > { %216 = sbr.rel (%p213_p2) target bundleno = 653 (0x28d), region = 44  ;;  %1126 = vset.pattern.permute.xlu0 (!%p213_p2), %v1141_v2  ;;  %v1048_v3 = vld.sshfl [vmem:[%s1335_s5] sm:$0x33 pattern:$0x76325410] (!%p213_p2)  ;;  %387 = vmatprep.mubr.bf16.mxu1 (!%p213_p2), %v1141_v2  ;;  %s1144_s7 = smov (!%p213_p2), 2  }
   0x7   : > { %258 = vperm.xlu0 (!%p213_p2), %1126, %v255_v0   ;;  %v298_v4 = vcombine.high (!%p213_p2), %v1048_v3, %v1048_v3  ;;  %v332_v5 = vshrl.u32 (!%p213_p2), %v331_v1, 7  ;;  %682 = vmatprep.mubr.bf16.mxu0 (!%p213_p2), %v1141_v2  ;;  %v263_v6 = vld [vmem:[%s1332_s2] sm:$0xff] (!%p213_p2)  ;;  %v301_v12 = vpack.c.bf16 (!%p213_p2), %v1048_v3, %v1048_v3  ;;  %s1145_s8 = smov (!%p213_p2), 16   ;;  %s1146_s9 = smov (!%p213_p2), 34   ;;  %vm348_vm2 = vcmask (!%p213_p2), 1043456  }
   0x8   : > { %1132 = vset.pattern.permute.xlu1 (!%p213_p2), %v1141_v2  ;;  %p242_p3 = scmp.lt.s32.totalorder (!%p213_p2), %s1039_s22, 1  ;;  %s1147_s14 = smov (!%p213_p2), 17   ;;  %v303_v40 = vld [vmem:[%s1333_s3] sm:$0xff] (!%p213_p2)  ;;  %vm344_vm3 = vcmask (!%p213_p2), 64512   ;;  %vm773_vm4 = vcmask (!%p213_p2), 261120   ;;  %vm482_vm5 = vcmask (!%p213_p2), 15360  }
   0x9   : > { %v302_v7 = vpack.c.bf16 (!%p213_p2), %v298_v4, %v298_v4  ;;  %v333_v8 = vsub.s32 (!%p213_p2), 0, %v332_v5  ;;  %v462_v14 = vshrl.u32 (!%p213_p2), %v301_v12, 16  ;;  %v329_v18 = vpack.i.b16 (!%p213_p2), %v301_v12, %v301_v12  ;;  %s1148_s15 = smov (!%p213_p2), 111   ;;  %s1149_s18 = smov (!%p213_p2), 110   ;;  %v321_v12 = vld [vmem:[%s1334_s4] sm:$0xff] (!%p213_p2) }
   0xa   : > { %v312_v48 = vpack.c.bf16 (!%p213_p2), %v303_v40, %v303_v40  ;;  %s1150_s19 = smov (!%p213_p2), 127   ;;  %s1151_s20 = smov (!%p213_p2), 96   ;;  %vm560_vm6 = vcmask (!%p213_p2), 130048   ;;  %vm910_vm7 = vcmask (!%p213_p2), 277504   ;;  %vm638_vm8 = vcmask (!%p213_p2), 908288  }
   0xb   : > { %266 = vperm.xlu0 (!%p213_p2), %1126, %v263_v6   ;;  %v469_v9 = vshrl.u32 (!%p213_p2), %v302_v7, 16  ;;  %v336_v11 = vpack.i.b16 (!%p213_p2), %v302_v7, %v302_v7  ;;  %v463_v16 = vpack.i.b16 (!%p213_p2), %v462_v14, %v462_v14  ;;  %v334_v19 = vrot.slane (!%p213_p2), %v329_v18, %v333_v8  ;;  %s1152_s23 = smov (!%p213_p2), 126   ;;  %s1153_s24 = smov (!%p213_p2), 95  }
   0xc   : > { %s1154_s25 = smov (!%p213_p2), 112   ;;  %s1155_s26 = smov (!%p213_p2), 94   ;;  %vm714_vm9 = vcmask (!%p213_p2), 900096   ;;  %vm407_vm10 = vcmask (!%p213_p2), 1039360   ;;  %vm790_vm11 = vcmask (!%p213_p2), 785408   ;;  %vm499_vm12 = vcmask (!%p213_p2), 1031168  }
   0xd   : > { %v470_v10 = vpack.i.b16 %v469_v9, %v469_v9  ;;  %v341_v15 = vrot.slane %v336_v11, %v333_v8  ;;  %v468_v17 = vrot.slane %v463_v16, %v333_v8  ;;  %s1338_s22 = smov (!%p242_p3, %s1039_s22), 1  ;;  %v307_v16 = vld [vmem:[%s1333_s3 + $0x20] sm:$0xff]  ;;  %vm851_vm13 = vcmask 777216  }
   0xe   : > { %s1069_s10 = sshll.u32 %s1338_s22, 4  ;;  %vm577_vm14 = vcmask 916480   ;;  %vm927_vm15 = vcmask 769024  }
   0xf   : > { %v475_v13 = vrot.slane %v470_v10, %v333_v8  ;;  %s246_s13 = scalar_lea.vmem %s1330_s0, %s1069_s10 }
  0x10   : > { %v253_v21 = vld [vmem:[%s246_s13] sm:$0xff]  ;;  %v254_v22 = vld [vmem:[%s246_s13 + $0x8] sm:$0xff] }
  0x11   : > { %695 = vrot.lane.b32.xlu0 %v475_v13, %s1142_s29 }
  0x15   : > { %771 = vrot.lane.b32.xlu0 %v341_v15, %s1143_s30 }
  0x19   : > { %480 = vrot.lane.b32.xlu0 %v475_v13, %s1144_s7 }
  0x1d   : > { %558 = vrot.lane.b32.xlu0 %v341_v15, %s1145_s8 }
  0x21   : > { %908 = vrot.lane.b32.xlu0 %v475_v13, %s1146_s9 }
  0x86   : > { %v259_v20 = vpop.permute.xlu0 %258 }
  0x87   : > { %v261_v23 = vmul.f32 %v259_v20, %v253_v21  ;;  %v262_v24 = vmul.f32 %v259_v20, %v254_v22  ;;  %v316_v21 = vpack.c.bf16 %v307_v16, %v307_v16 }
  0x8a   : > { %v267_v25 = vpop.permute.xlu0 %266 }
  0x8b   : > { %v269_v26 = vadd.f32 %v267_v25, %v261_v23  ;;  %v270_v27 = vadd.f32 %v267_v25, %v262_v24 }
  0x8d   : > { %v271_v28 = vmax.f32 %v269_v26, 0.0  ;;  %v272_v29 = vmax.f32 %v270_v27, 0.0 }
  0x8e   : > { %v696_v43 = vpop.permute.xlu0 %695 }
  0x8f   : > { %v1127_v30 = vpack.i.bf16 %v272_v29, %v271_v28 }
  0x91   : > { %1128 = vrot.lane.b32.xlu1 %v1127_v30, %s1147_s14  ;;  %v304_v30 = vld [vmem:[%s1333_s3 + $0x8] sm:$0xff] }
  0x92   : > { %v772_v52 = vpop.permute.xlu0 %771 }
  0x95   : > { %693 = vrot.lane.b32.xlu1 %v468_v17, %s1142_s29 }
  0x96   : > { %v481_v59 = vpop.permute.xlu0 %480 }
  0x99   : > { %769 = vrot.lane.b32.xlu1 %v334_v19, %s1143_s30 }
  0x9a   : > { %v559_v0 = vpop.permute.xlu0 %558 }
  0x9d   : > { %478 = vrot.lane.b32.xlu1 %v468_v17, %s1144_s7 }
  0x9e   : > { %v909_v7 = vpop.permute.xlu0 %908 }
  0xa1   : > { %556 = vrot.lane.b32.xlu1 %v334_v19, %s1145_s8 }
  0xa5   : > { %906 = vrot.lane.b32.xlu1 %v468_v17, %s1146_s9 }
 0x103   : > { %v1129_v31 = vpop.permute.xlu1 %1128 }
 0x104   : > { %v1131_v32 = vunpack.i.h.bf16 %v1129_v31  ;;  %v1130_v33 = vunpack.i.l.bf16 %v1129_v31  ;;  %v308_v31 = vld [vmem:[%s1333_s3 + $0x28] sm:$0xff] }
 0x106   : > { %v280_v34 = vsel %vm279_vm0, %v1130_v33, %v1131_v32  ;;  %v284_v35 = vsel %vm279_vm0, 0.0, %v1130_v33  ;;  %v285_v38 = vsel %vm279_vm0, %v1131_v32, 0.0 }
 0x107   : > { %v1226_v36 = vpack.c.bf16 %v284_v35, %v284_v35  ;;  %v1228_v37 = vpack.c.bf16 %v280_v34, %v280_v34  ;;  %v694_v39 = vpop.permute.xlu1 %693  ;;  %v1237_v44 = vpack.c.bf16 %v285_v38, %v285_v38 }
 0x108   : > { %v698_v45 = vsel %vm697_vm1, %v694_v39, %v696_v43 }
 0x109   : > { %632 = vrot.lane.b32.xlu1 %v1226_v36, %s1148_s15  ;;  %634 = vrot.lane.b32.xlu0 %v1228_v37, %s1148_s15  ;;  %v343_v41 = vmul.bf16 %v341_v15, %v1228_v37  ;;  %v342_v42 = vmul.bf16 %v334_v19, %v1226_v36  ;;  %v702_v46 = vmul.bf16 %v694_v39, %v1226_v36 }
 0x10a   : > { %v703_v49 = vmul.bf16 %v698_v45, %v1228_v37  ;;  %v704_v50 = vmul.bf16 %v696_v43, %v1237_v44  ;;  %v780_v57 = vmul.bf16 %v772_v52, %v1237_v44  ;;  %v489_v61 = vmul.bf16 %v481_v59, %v1237_v44  ;;  %v309_v45 = vld [vmem:[%s1333_s3 + $0x30] sm:$0xff] }
 0x10b   : > { %1049 = vmatprep.subr.msk.bf16.mxu1 %vm348_vm2, %v343_v41  ;;  %v350_v47 = vsel %vm348_vm2, %v342_v42, 0  ;;  %v770_v51 = vpop.permute.xlu1 %769  ;;  %v567_v6 = vmul.bf16 %v559_v0, %v1237_v44  ;;  %v917_v11 = vmul.bf16 %v909_v7, %v1237_v44 }
 0x10c   : > { %356 = vmatpush1.bf16.msra.mxu1 %v350_v47  ;;  %v774_v53 = vsel %vm773_vm4, %v770_v51, %v772_v52  ;;  %v778_v54 = vmul.bf16 %v770_v51, %v1226_v36  ;;  %v305_v47 = vld [vmem:[%s1333_s3 + $0x10] sm:$0xff]  ;;  %v318_v51 = vpack.c.bf16 %v309_v45, %v309_v45 }
 0x10d   : > { %636 = vrot.lane.b32.xlu1 %v1237_v44, %s1148_s15  ;;  %708 = vrot.lane.b32.xlu0 %v702_v46, %s1149_s18  ;;  %v779_v55 = vmul.bf16 %v774_v53, %v1228_v37  ;;  %v314_v53 = vpack.c.bf16 %v305_v47, %v305_v47 }
 0x10f   : > { %1050 = vmatmul.mubr.msk.bf16.vlgmr.msra.gmra.mrb[0].mxu1 %vm344_vm3, %v312_v48  ;;  %v479_v56 = vpop.permute.xlu1 %478 }
 0x110   : > { %451 = vmatprep.mubr.bf16.mxu1 %v1141_v2  ;;  %v487_v58 = vmul.bf16 %v479_v56, %v1226_v36  ;;  %v483_v60 = vsel %vm482_vm5, %v479_v56, %v481_v59 }
 0x111   : > { %710 = vrot.lane.b32.xlu1 %v703_v49, %s1149_s18  ;;  %712 = vrot.lane.b32.xlu0 %v704_v50, %s1149_s18  ;;  %v488_v62 = vmul.bf16 %v483_v60, %v1228_v37 }
 0x113   : > { %v557_v63 = vpop.permute.xlu1 %556 }
 0x114   : > { %v561_v1 = vsel %vm560_vm6, %v557_v63, %v559_v0  ;;  %v565_v3 = vmul.bf16 %v557_v63, %v1226_v36  ;;  %v306_v0 = vld [vmem:[%s1333_s3 + $0x18] sm:$0xff] }
 0x115   : > { %401 = vrot.lane.b32.xlu1 %v1226_v36, %s1150_s19  ;;  %403 = vrot.lane.b32.xlu0 %v1228_v37, %s1150_s19  ;;  %v566_v4 = vmul.bf16 %v561_v1, %v1228_v37 }
 0x117   : > { %v907_v5 = vpop.permute.xlu1 %906 }
 0x118   : > { %v911_v8 = vsel %vm910_vm7, %v907_v5, %v909_v7  ;;  %v915_v9 = vmul.bf16 %v907_v5, %v1226_v36 }
 0x119   : > { %405 = vrot.lane.b32.xlu1 %v1237_v44, %s1150_s19  ;;  %784 = vrot.lane.b32.xlu0 %v778_v54, %s1151_s20  ;;  %v916_v10 = vmul.bf16 %v911_v8, %v1228_v37 }
 0x11d   : > { %786 = vrot.lane.b32.xlu1 %v779_v55, %s1151_s20  ;;  %788 = vrot.lane.b32.xlu0 %v780_v57, %s1151_s20 }
 0x121   : > { %493 = vrot.lane.b32.xlu1 %v487_v58, %s1152_s23  ;;  %845 = vrot.lane.b32.xlu0 %v1226_v36, %s1153_s24  ;;  %v313_v36 = vpack.c.bf16 %v304_v30, %v304_v30 }
 0x125   : > { %497 = vrot.lane.b32.xlu1 %v489_v61, %s1152_s23  ;;  %495 = vrot.lane.b32.xlu0 %v488_v62, %s1152_s23  ;;  %v310_v62 = vld [vmem:[%s1333_s3 + $0x38] sm:$0xff] }
 0x126   : > { %v319_v5 = vpack.c.bf16 %v310_v62, %v310_v62 }
 0x129   : > { %847 = vrot.lane.b32.xlu1 %v1228_v37, %s1153_s24  ;;  %849 = vrot.lane.b32.xlu0 %v1237_v44, %s1153_s24  ;;  %v317_v37 = vpack.c.bf16 %v308_v31, %v308_v31 }
 0x12d   : > { %571 = vrot.lane.b32.xlu1 %v565_v3, %s1154_s25  ;;  %573 = vrot.lane.b32.xlu0 %v566_v4, %s1154_s25 }
 0x131   : > { %575 = vrot.lane.b32.xlu1 %v567_v6, %s1154_s25  ;;  %921 = vrot.lane.b32.xlu0 %v915_v9, %s1155_s26  ;;  %v315_v6 = vpack.c.bf16 %v306_v0, %v306_v0 }
 0x135   : > { %923 = vrot.lane.b32.xlu1 %v916_v10, %s1155_s26  ;;  %925 = vrot.lane.b32.xlu0 %v917_v11, %s1155_s26  ;;  %s251_s26 = scalar_lea.vmem %s1336_s6, %s1069_s10 }
 0x139   : > { %324 = vperm.xlu1 %1132, %v321_v12   ;;  %v311_v12 = vld [vmem:[%s1333_s3 + $0x40] sm:$0xff] }
 0x17b   : > { %v633_v13 = vpop.permute.xlu1 %632  ;;  %v635_v14 = vpop.permute.xlu0 %634 }
 0x17c   : > { %v639_v15 = vsel %vm638_vm8, %v633_v13, %v635_v14  ;;  %v320_v13 = vpack.c.bf16 %v311_v12, %v311_v12 }
 0x17d   : > { %v645_v20 = vsel %vm348_vm2, %v639_v15, 0 }
 0x17f   : > { %v637_v17 = vpop.permute.xlu1 %636  ;;  %v709_v18 = vpop.permute.xlu0 %708 }
 0x180   : > { %v640_v19 = vsel %vm638_vm8, %v635_v14, %v637_v17 }
 0x181   : > { %1057 = vmatprep.subr.msk.bf16.mxu0 %vm348_vm2, %v640_v19 }
 0x182   : > { %651 = vmatpush1.bf16.msra.mxu0 %v645_v20 }
 0x183   : > { %v711_v22 = vpop.permute.xlu1 %710  ;;  %v713_v23 = vpop.permute.xlu0 %712 }
 0x184   : > { %v715_v24 = vsel %vm714_vm9, %v709_v18, %v711_v22  ;;  %v716_v25 = vsel %vm714_vm9, %v711_v22, %v713_v23 }
 0x185   : > { %v721_v26 = vsel %vm348_vm2, %v715_v24, 0  ;;  %1058 = vmatmul.mubr.msk.bf16.vlgmr.msra.gmra.mrb[0].mxu0 %vm344_vm3, %v316_v21  ;;  %1059 = vmatprep.subr.msk.bf16.mxu0 %vm348_vm2, %v716_v25 }
 0x186   : > { %758 = vmatprep.mubr.bf16.mxu0 %v1141_v2  ;;  %727 = vmatpush1.bf16.msra.mxu0 %v721_v26 }
 0x187   : > { %v402_v27 = vpop.permute.xlu1 %401  ;;  %v404_v28 = vpop.permute.xlu0 %403 }
 0x188   : > { %v408_v29 = vsel %vm407_vm10, %v402_v27, %v404_v28 }
 0x189   : > { %v414_v35 = vsel %vm348_vm2, %v408_v29, 0 }
 0x18b   : > { %v406_v32 = vpop.permute.xlu1 %405  ;;  %v785_v33 = vpop.permute.xlu0 %784 }
 0x18c   : > { %v409_v34 = vsel %vm407_vm10, %v404_v28, %v406_v32 }
 0x18d   : > { %1051 = vmatprep.subr.msk.bf16.mxu1 %vm348_vm2, %v409_v34 }
 0x18e   : > { %420 = vmatpush1.bf16.msra.mxu1 %v414_v35 }
 0x18f   : > { %v787_v38 = vpop.permute.xlu1 %786  ;;  %v789_v39 = vpop.permute.xlu0 %788 }
 0x190   : > { %v791_v40 = vsel %vm790_vm11, %v785_v33, %v787_v38  ;;  %v792_v41 = vsel %vm790_vm11, %v787_v38, %v789_v39 }
 0x191   : > { %v797_v42 = vsel %vm348_vm2, %v791_v40, 0  ;;  %1052 = vmatmul.mubr.msk.bf16.vlgmr.msra.gmra.mrb[0].mxu1 %vm344_vm3, %v313_v36  ;;  %1060 = vmatmul.mubr.msk.bf16.vlgmr.msra.gmra.mrb[0].mxu0 %vm344_vm3, %v317_v37 }
 0x192   : > { %1061 = vmatprep.subr.msk.bf16.mxu0 %vm348_vm2, %v792_v41  ;;  %543 = vmatprep.mubr.bf16.mxu1 %v1141_v2 }
 0x193   : > { %803 = vmatpush1.bf16.msra.mxu0 %v797_v42  ;;  %v494_v43 = vpop.permute.xlu1 %493  ;;  %834 = vmatprep.mubr.bf16.mxu0 %v1141_v2  ;;  %v846_v44 = vpop.permute.xlu0 %845 }
 0x197   : > { %v498_v46 = vpop.permute.xlu1 %497  ;;  %v496_v48 = vpop.permute.xlu0 %495 }
 0x198   : > { %v500_v49 = vsel %vm499_vm12, %v494_v43, %v496_v48  ;;  %v501_v50 = vsel %vm499_vm12, %v496_v48, %v498_v46 }
 0x199   : > { %v506_v52 = vsel %vm348_vm2, %v500_v49, 0  ;;  %1053 = vmatprep.subr.msk.bf16.mxu1 %vm348_vm2, %v501_v50 }
 0x19a   : > { %512 = vmatpush1.bf16.msra.mxu1 %v506_v52 }
 0x19b   : > { %v848_v54 = vpop.permute.xlu1 %847  ;;  %v850_v56 = vpop.permute.xlu0 %849 }
 0x19c   : > { %v852_v55 = vsel %vm851_vm13, %v846_v44, %v848_v54  ;;  %v853_v58 = vsel %vm851_vm13, %v848_v54, %v850_v56 }
 0x19d   : > { %v858_v57 = vsel %vm348_vm2, %v852_v55, 0  ;;  %1062 = vmatmul.mubr.msk.bf16.vlgmr.msra.gmra.mrb[0].mxu0 %vm344_vm3, %v318_v51  ;;  %1054 = vmatmul.mubr.msk.bf16.vlgmr.msra.gmra.mrb[0].mxu1 %vm344_vm3, %v314_v53 }
 0x19e   : > { %1063 = vmatprep.subr.msk.bf16.mxu0 %vm348_vm2, %v853_v58  ;;  %621 = vmatprep.mubr.bf16.mxu1 %v1141_v2 }
 0x19f   : > { %864 = vmatpush1.bf16.msra.mxu0 %v858_v57  ;;  %v572_v59 = vpop.permute.xlu1 %571  ;;  %v574_v60 = vpop.permute.xlu0 %573  ;;  %895 = vmatprep.mubr.bf16.mxu0 %v1141_v2 }
 0x1a0   : > { %v578_v61 = vsel %vm577_vm14, %v572_v59, %v574_v60 }
 0x1a1   : > { %v584_v4 = vsel %vm348_vm2, %v578_v61, 0 }
 0x1a3   : > { %v576_v63 = vpop.permute.xlu1 %575  ;;  %v922_v3 = vpop.permute.xlu0 %921 }
 0x1a4   : > { %v579_v1 = vsel %vm577_vm14, %v574_v60, %v576_v63 }
 0x1a5   : > { %1055 = vmatprep.subr.msk.bf16.mxu1 %vm348_vm2, %v579_v1 }
 0x1a6   : > { %590 = vmatpush1.bf16.msra.mxu1 %v584_v4 }
 0x1a7   : > { %v924_v7 = vpop.permute.xlu1 %923  ;;  %v926_v9 = vpop.permute.xlu0 %925 }
 0x1a8   : > { %v928_v8 = vsel %vm927_vm15, %v922_v3, %v924_v7  ;;  %v929_v11 = vsel %vm927_vm15, %v924_v7, %v926_v9 }
 0x1a9   : > { %v934_v10 = vsel %vm348_vm2, %v928_v8, 0  ;;  %1064 = vmatmul.mubr.msk.bf16.vlgmr.msra.gmra.mrb[0].mxu0 %vm344_vm3, %v319_v5  ;;  %1056 = vmatmul.mubr.msk.bf16.vlgmr.msra.gmra.mrb[0].mxu1 %vm344_vm3, %v315_v6 }
 0x1aa   : > { %1065 = vmatprep.subr.msk.bf16.mxu0 %vm348_vm2, %v929_v11  ;;  %971 = vmatprep.mubr.bf16.mxu0 %v1141_v2 }
 0x1ab   : > { %940 = vmatpush1.bf16.msra.mxu0 %v934_v10 }
 0x1b5   : > { %1066 = vmatmul.mubr.msk.bf16.vlgmr.msra.gmra.mrb[0].mxu0 %vm344_vm3, %v320_v13 }
 0x1b8   : > { %v325_v18 = vpop.permute.xlu1 %324 }
 0x27c   : > { %v623_v14 = vpop.f32.mrb[0].mxu1 }
 0x27d   : > { %v625_v15 = vpop.f32.mrb[1].mxu1  ;;  %v1071_v19 = vadd.f32 %v623_v14, %v325_v18 }
 0x27e   : > { %v627_v16 = vpop.f32.mrb[2].mxu1  ;;  %v1073_v20 = vadd.f32 %v625_v15, %v325_v18 }
 0x27f   : > { %v628_v17 = vpop.f32.mrb[3].mxu1 }
 0x288   : > { %v973_v2 = vpop.f32.mrb[0].mxu0 }
 0x289   : > { %v1072_v21 = vadd.f32 %v1071_v19, %v973_v2  ;;  %v975_v22 = vpop.f32.mrb[1].mxu0 }
 0x28a   : > { %v1074_v23 = vadd.f32 %v1073_v20, %v975_v22  ;;  %v977_v24 = vpop.f32.mrb[2].mxu0 }
 0x28b   : > { %982 = vst [vmem:[%s251_s26] sm:$0xff] %v1072_v21  ;;  %v978_v25 = vpop.f32.mrb[3].mxu0 }
 0x28c   : > { %983 = vst [vmem:[%s251_s26 + $0x8] sm:$0xff] %v1074_v23 }
 0x28d PF: > { %s16_s21 = sadd.s32 1, %s1139_s21  }
 0x28e   : > { %p13_p4 = scmp.ge.s32.totalorder %s16_s21, 4  }
 0x290   :  { %15 = sbr.rel (!%p13_p4) target bundleno = 1 (0x1), region = 74 }

</bundles_post_ra>
